<compile_context>
chip_gen: v6e
topology: v6e:2x2x1
jax: 0.10.0
libtpu: 0.0.40
codegen_flags: <defaults>
</compile_context>

<pallas_src>
import jax
import jax.numpy as jnp
from jax.experimental import pallas as pl
from jax.experimental.pallas import tpu as pltpu


def _round_up(x, m):
    return ((x + m - 1) // m) * m


def _pick_tile(total, prefs):
    for p in prefs:
        if total % p == 0:
            return p
    return min(total, 128)


def _vmem_capacity_bytes():
    try:
        return int(pltpu.get_tpu_info().vmem_capacity_bytes)
    except Exception:
        return 64 << 20  # conservative (v7x-sized) fallback


def _masked_matmul_kernel(g_ref, x_ref, o_ref, acc_ref):
    # g_ref: (tr, tk)   x_ref: (1, tk, tc)   o_ref: (1, tr, tc)   acc: (tr, tc) f32
    @pl.when(pl.program_id(3) == 0)
    def _():
        acc_ref[...] = jnp.zeros_like(acc_ref)

    acc_ref[...] += jnp.dot(
        g_ref[...], x_ref[0], preferred_element_type=jnp.float32
    )

    @pl.when(pl.program_id(3) == pl.num_programs(3) - 1)
    def _():
        o_ref[0] = acc_ref[...].astype(o_ref.dtype)


def joint_spatial_sp_forward(adj, mask, x, *, compute_dtype=None, force_kernel=False):
    """adj, mask: (N, N); x: (K, N, L, M) -> (K, N, L, M) (dtype of x)."""
    K, N, L, M = x.shape
    F = L * M
    out_dtype = x.dtype

    masked = adj + mask  # computed once, amortized over the whole matmul

    # Small-shape fast path: the MXU tile is mostly idle and pad/step overhead
    # dominates -> plain XLA einsum wins.
    if not force_kernel:
        approx_bytes = (N * N + 2 * K * N * F) * 4
        if approx_bytes < (1 << 20):
            return jnp.einsum("ij,kjlm->kilm", masked, x).astype(out_dtype)

    if compute_dtype is None:
        # bf16 feeds the MXU at native rate; auto-select only when the input is
        # already bf16 so f32 inputs stay numerically faithful.
        compute_dtype = jnp.bfloat16 if x.dtype == jnp.bfloat16 else jnp.float32

    # Layout: skip the (K,N,L,M)<->(N,K*L*M) transpose copies when the feature
    # axis is already lane-dense; otherwise fold K into the column axis.
    if F >= 128:
        B, cols = K, F
        x3 = x.reshape(K, N, F)  # free reshape (row-major)
    else:
        B, cols = 1, K * F
        x3 = jnp.transpose(x, (1, 0, 2, 3)).reshape(1, N, K * F)

    N_pad = _round_up(N, 128)
    Cp = _round_up(cols, 128)

    # Generation-aware tile / VMEM-limit selection.
    vmem_cap = _vmem_capacity_bytes()
    if vmem_cap >= (100 << 20):  # v5e / v6e: 128 MiB physical VMEM
        tr_prefs = (512, 256, 128)
        tk_prefs = (1024, 512, 256, 128)
        tc_prefs = (1024, 512, 256, 128)
        vmem_ceiling = 100 << 20
    else:  # v7x: 64 MiB physical VMEM
        tr_prefs = (256, 128)
        tk_prefs = (512, 256, 128)
        tc_prefs = (512, 256, 128)
        vmem_ceiling = 48 << 20

    tr = _pick_tile(N_pad, tr_prefs)
    tk = _pick_tile(N_pad, tk_prefs)
    tc = _pick_tile(Cp, tc_prefs)
    # Keep >= 2 parallel tiles when possible so both v7x TensorCores get work.
    if B * (N_pad // tr) * (Cp // tc) < 2 and tr >= 256:
        tr //= 2

    # Zero-pad operands (exact: padded rows/cols contribute zero).
    masked_p = masked.astype(compute_dtype)
    if N_pad != N:
        masked_p = jnp.pad(masked_p, ((0, N_pad - N), (0, N_pad - N)))
    x3 = x3.astype(compute_dtype)
    if N_pad != N or Cp != cols:
        x3 = jnp.pad(x3, ((0, 0), (0, N_pad - N), (0, Cp - cols)))

    in_item = jnp.dtype(compute_dtype).itemsize
    out_item = jnp.dtype(out_dtype).itemsize
    per_step = (2 * (tr * tk + tk * tc) * in_item  # double-buffered inputs
                + 2 * tr * tc * out_item           # double-buffered output
                + tr * tc * 4)                     # f32 accumulator
    vmem_limit = int(min(max(per_step + (8 << 20), 32 << 20), vmem_ceiling))

    R, Ct, Kc = N_pad // tr, Cp // tc, N_pad // tk
    cost = pl.CostEstimate(
        flops=2 * B * N_pad * N_pad * Cp,
        transcendentals=0,
        # Account for the per-step re-reads of both operand tiles.
        bytes_accessed=int(B * R * Ct * Kc * (tr * tk + tk * tc) * in_item
                           + B * N_pad * Cp * out_item),
    )

    y = pl.pallas_call(
        _masked_matmul_kernel,
        out_shape=jax.ShapeDtypeStruct((B, N_pad, Cp), out_dtype),
        grid_spec=pltpu.PrefetchScalarGridSpec(
            num_scalar_prefetch=0,
            grid=(B, R, Ct, Kc),
            in_specs=[
                pl.BlockSpec((tr, tk), lambda b, r, c, k: (r, k)),      # masked rows
                pl.BlockSpec((1, tk, tc), lambda b, r, c, k: (b, k, c)),  # x panel
            ],
            out_specs=pl.BlockSpec((1, tr, tc), lambda b, r, c, k: (b, r, c)),
            scratch_shapes=[pltpu.VMEM((tr, tc), jnp.float32)],
        ),
        compiler_params=pltpu.CompilerParams(
            dimension_semantics=("parallel", "parallel", "parallel", "arbitrary"),
            vmem_limit_bytes=vmem_limit,
        ),
        cost_estimate=cost,
    )(masked_p, x3)

    # Undo padding / layout plumbing.
    if F >= 128:
        out = y[:, :N, :F].reshape(K, N, L, M)
    else:
        out = y[0, :N, :K * F].reshape(N, K, L, M).transpose(1, 0, 2, 3)
    return out.astype(out_dtype)


if __name__ == "__main__":
    key = jax.random.PRNGKey(0)
    k_adj, k_mask, k_x, k_adj2, k_mask2, k_x2 = jax.random.split(key, 6)

    # Case 1: lane-dense feature axis (L*M = 128) -> batched, transpose-free path.
    K, N, L, M = 2, 64, 8, 16
    adj = jax.random.normal(k_adj, (N, N), dtype=jnp.float32)
    mask = jax.random.normal(k_mask, (N, N), dtype=jnp.float32)
    x = jax.random.normal(k_x, (K, N, L, M), dtype=jnp.float32)

    out = joint_spatial_sp_forward(adj, mask, x, force_kernel=True)
    out = jax.block_until_ready(out)
    ref = jnp.einsum("ij,kjlm->kilm", adj + mask, x)
    assert out.shape == (K, N, L, M)
    assert jnp.allclose(out, ref, atol=1e-3, rtol=1e-3), "case 1 mismatch vs reference"

    # Case 2: small, non-128-aligned shape -> fold-K path with zero-padding.
    K2, N2, L2, M2 = 3, 50, 5, 6
    adj2 = jax.random.normal(k_adj2, (N2, N2), dtype=jnp.float32)
    mask2 = jax.random.normal(k_mask2, (N2, N2), dtype=jnp.float32)
    x2 = jax.random.normal(k_x2, (K2, N2, L2, M2), dtype=jnp.float32)

    out2 = joint_spatial_sp_forward(adj2, mask2, x2, force_kernel=True)
    out2 = jax.block_until_ready(out2)
    ref2 = jnp.einsum("ij,kjlm->kilm", adj2 + mask2, x2)
    assert out2.shape == (K2, N2, L2, M2)
    assert jnp.allclose(out2, ref2, atol=1e-3, rtol=1e-3), "case 2 mismatch vs reference"

    print("KERNEL_OK")
</pallas_src>

<mosaic_0001>
module attributes {stable_mosaic.version = 11 : i64} {
  func.func @_masked_matmul_kernel(%arg0: i32, %arg1: i32, %arg2: i32, %arg3: i32, %arg4: memref<128x128xf32, #tpu.memory_space<vmem>>, %arg5: memref<1x128x128xf32, #tpu.memory_space<vmem>>, %arg6: memref<1x128x128xf32, #tpu.memory_space<vmem>>, %arg7: memref<128x128xf32, #tpu.memory_space<vmem>>) attributes {dimension_semantics = [#tpu.dimension_semantics<parallel>, #tpu.dimension_semantics<parallel>, #tpu.dimension_semantics<parallel>, #tpu.dimension_semantics<arbitrary>], iteration_bounds = array<i64: 2, 1, 1, 1>, scalar_prefetch = 0 : i64, scratch_operands = 1 : i64, tpu.core_type = #tpu.core_type<tc>, window_params = [{transform_indices = @transform_0, window_bounds = array<i64: 128, 128>}, {transform_indices = @transform_1, window_bounds = array<i64: 1, 128, 128>}, {transform_indices = @transform_2, window_bounds = array<i64: 1, 128, 128>}]} {
    %c0_i32 = arith.constant 0 : i32
    %0 = arith.cmpi eq, %arg3, %c0_i32 : i32
    %1 = arith.extui %0 : i1 to i32
    %c0_i32_0 = arith.constant 0 : i32
    %2 = arith.cmpi ne, %1, %c0_i32_0 : i32
    scf.if %2 {
      %cst_11 = arith.constant 0.000000e+00 : f32
      %13 = vector.broadcast %cst_11 : f32 to vector<128x128xf32>
      %c0_12 = arith.constant 0 : index
      %c0_13 = arith.constant 0 : index
      %14 = vector.load %arg7[%c0_12, %c0_13] : memref<128x128xf32, #tpu.memory_space<vmem>>, vector<128x128xf32>
      tpu.vector_store %arg7[%c0_12, %c0_13], %13 {strides = array<i32>} : memref<128x128xf32, #tpu.memory_space<vmem>>, vector<128x128xf32>,
    } else {
    }
    %c0 = arith.constant 0 : index
    %c0_1 = arith.constant 0 : index
    %3 = vector.load %arg7[%c0, %c0_1] : memref<128x128xf32, #tpu.memory_space<vmem>>, vector<128x128xf32>
    %c0_2 = arith.constant 0 : index
    %c0_3 = arith.constant 0 : index
    %4 = vector.load %arg4[%c0_2, %c0_3] : memref<128x128xf32, #tpu.memory_space<vmem>>, vector<128x128xf32>
    %c0_4 = arith.constant 0 : index
    %c0_5 = arith.constant 0 : index
    %c0_6 = arith.constant 0 : index
    %5 = vector.load %arg5[%c0_4, %c0_5, %c0_6] : memref<1x128x128xf32, #tpu.memory_space<vmem>>, vector<1x128x128xf32>
    %6 = vector.shape_cast %5 : vector<1x128x128xf32> to vector<128x128xf32>
    %cst = arith.constant dense<0.000000e+00> : vector<128x128xf32>
    %7 = tpu.matmul %4, %6, %cst {dimension_numbers = #tpu.dot_dimension_numbers<[1], [0], [0], [1], [0, 0, 1, 1], [], []>} : vector<128x128xf32>, vector<128x128xf32>, vector<128x128xf32> -> vector<128x128xf32>
    %8 = arith.addf %3, %7 : vector<128x128xf32>
    %c0_7 = arith.constant 0 : index
    %c0_8 = arith.constant 0 : index
    %9 = vector.load %arg7[%c0_7, %c0_8] : memref<128x128xf32, #tpu.memory_space<vmem>>, vector<128x128xf32>
    tpu.vector_store %arg7[%c0_7, %c0_8], %8 {strides = array<i32>} : memref<128x128xf32, #tpu.memory_space<vmem>>, vector<128x128xf32>,
    %c0_i32_9 = arith.constant 0 : i32
    %10 = arith.cmpi eq, %arg3, %c0_i32_9 : i32
    %11 = arith.extui %10 : i1 to i32
    %c0_i32_10 = arith.constant 0 : i32
    %12 = arith.cmpi ne, %11, %c0_i32_10 : i32
    scf.if %12 {
      %c0_11 = arith.constant 0 : index
      %c0_12 = arith.constant 0 : index
      %13 = vector.load %arg7[%c0_11, %c0_12] : memref<128x128xf32, #tpu.memory_space<vmem>>, vector<128x128xf32>
      %c0_13 = arith.constant 0 : index
      %c0_14 = arith.constant 0 : index
      %c0_15 = arith.constant 0 : index
      %14 = vector.load %arg6[%c0_13, %c0_14, %c0_15] : memref<1x128x128xf32, #tpu.memory_space<vmem>>, vector<1x128x128xf32>
      %15 = vector.shape_cast %14 : vector<1x128x128xf32> to vector<128x128xf32>
      %16 = vector.shape_cast %13 : vector<128x128xf32> to vector<1x128x128xf32>
      tpu.vector_store %arg6[%c0_13, %c0_14, %c0_15], %16 {strides = array<i32>} : memref<1x128x128xf32, #tpu.memory_space<vmem>>, vector<1x128x128xf32>,
    } else {
    }
    return
  }
  func.func @transform_0(%arg0: i32, %arg1: i32, %arg2: i32, %arg3: i32) -> (i32, i32) {
    %c0_i32 = arith.constant 0 : i32
    return %arg1, %arg3 : i32, i32
  }
  func.func @transform_1(%arg0: i32, %arg1: i32, %arg2: i32, %arg3: i32) -> (i32, i32, i32) {
    %c0_i32 = arith.constant 0 : i32
    return %arg0, %arg3, %arg2 : i32, i32, i32
  }
  func.func @transform_2(%arg0: i32, %arg1: i32, %arg2: i32, %arg3: i32) -> (i32, i32, i32) {
    %c0_i32 = arith.constant 0 : i32
    return %arg0, %arg1, %arg2 : i32, i32, i32
  }
}

</mosaic_0001>

<bundles_post_ra>
// kernel: tpu_custom_call.1
= control target key start
LH: loop header
LB: loop body
LE: loop exit
PB: predicated region body
PF: predicated region fallthrough
CT: control target
= control target key end

     0   :  { %7 = vsyncpa [#allocation4], 0  ;;  %s1242_s0 = inlined_call_operand.hbm [shape: f32[128,128], index: 0, kind: input, shape index: {}]   ;;  %s1243_s1 = inlined_call_operand.hbm [shape: f32[2,128,128], index: 1, kind: input, shape index: {}]   ;;  %s1244_s2 = inlined_call_operand.hbm [shape: f32[2,128,128], index: 2, kind: output, shape index: {}]  }
   0x1   :  { %8 = vsyncpa [#allocation7], 0 }
   0x2   :  { %10 = vsyncpa [#allocation7 + $0x1], 0 }
   0x3   :  { %11 = vsyncpa [#allocation5], 0 }
   0x4   :  { %13 = vsyncpa [#allocation5 + $0x1], 0  ;;  %s1014_s9 = smov 0   ;;  %s1016_s10 = smov 0  }
   0x5   :  { %s1018_s11 = smov 0   ;;  %s1020_s12 = smov 0  }
   0x6   :  { %s1022_s13 = smov 0   ;;  %s1024_s14 = smov 0  }
   0x7 LB: > { %s636_s15 = sadd.s32 4294967295, %s990_s14   ;;  %s637_s16 = sadd.s32 4294967294, %s990_s14   ;;  %s990_s14 = sphi %s1024_s14, %s19_s14   ;;  %s986_s13 = sphi %s1022_s13, %s1264_s13   ;;  %s982_s12 = sphi %s1020_s12, %s1263_s12   ;;  %s978_s11 = sphi %s1018_s11, %s1262_s11   ;;  %s974_s10 = sphi %s1016_s10, %s1261_s10   ;;  %s970_s9 = sphi %s1014_s9, %s1260_s9  }
   0x8   : > { %p97_p0 = scmp.ne.s32.totalorder %s974_s10, %s970_s9  ;;  %p1048_p1 = scmp.eq.s32.totalorder %s636_s15, 0 }
   0x9   : > { %p1052_p2 = scmp.eq.s32.totalorder %s636_s15, 1  ;;  %p131_p3 = scmp.eq.s32.totalorder %s637_s16, 1 }
   0xa   : > { %p1058_p4 = por %p1048_p1, %p97_p0  ;;  %p638_p5 = scmp.ge.s32.totalorder %s990_s14, 1 }
   0xb   : > { %p1063_p6 = por %p131_p3, %p97_p0  ;;  %p138_p7 = scmp.lt.s32.totalorder %s990_s14, 3 }
   0xc   : > { %s1249_s19 = scalar_select %p1058_p4, 1, 0 }
   0xd   : > { %s1250_s20 = scalar_select %p1063_p6, 1, 0 }
   0xe   : > { %p1068_p8 = pnand %p638_p5, %p138_p7  ;;  %s992_s22 = smov [#allocation3]  }
   0xf   : > { %s154_s23 = sshll.u32 %s992_s22, 4  ;;  %s45_s25 = sadd.s32 1, %s986_s13  ;;  %s155_s23 = int_to_ptr.vmem [resolvable:$true] %s154_s23 }
  0x10   : > { %p783_p9 = pneg %p1068_p8  ;;  %s863_s26 = scalar_lea.vmem %s155_s23, 2048 }
  0x11   : > { %p864_p13 = scmp.ne.s32.totalorder %s155_s23, %s863_s26  ;;  %p871_p5 = scmp.lt.s32.totalorder %s155_s23, %s155_s23 }
  0x12   : > { %p1077_p11 = pnand %p783_p9, %p1048_p1  ;;  %p872_p7 = scmp.lt.s32.totalorder %s863_s26, %s863_s26 }
  0x14   : > { %p854_p12 = pneg %p1077_p11  ;;  %p873_p6 = por %p872_p7, %p871_p5 }
  0x16   : > { %p866_p0 = pnand %p864_p13, %p854_p12 }
  0x18   : > { %p867_p3 = pneg %p866_p0 }
  0x1a   : > { %p874_p4 = pnand %p873_p6, %p867_p3 }
  0x1c   : > { %877 = shalt.err (!%p874_p4)
}
  0x1d   : > { %s1246_s27 = smov 128   ;;  %s994_s28 = smov 8  }
  0x1e   : > { %786 = dma.hbm_to_vmem [thread:$0]  (!%p1077_p11), %s1242_s0, 2048, %s155_s23, [#allocation4], %s1246_s27, %s1246_s27, %s994_s28  }
  0x1f   : > { %p47_p4 = scmp.ge.s32.totalorder %s45_s25, 2  ;;  %s84_s3 = sadd.s32 1, %s978_s11 }
  0x20   : > { %p91_p6 = scmp.ne.s32.totalorder %s978_s11, %s974_s10  ;;  %p92_p9 = scmp.eq.s32.totalorder %s990_s14, 0 }
  0x21   : > { %s1266_s25 = smov (%p47_p4, %s45_s25), 0  ;;  %p796_p0 = scmp.lt.s32.totalorder %s990_s14, 2 }
  0x22   : > { %p1098_p12 = por %p92_p9, %p91_p6  ;;  %p1104_p13 = por %p1052_p2, %p91_p6 }
  0x23   : > { %s77_s6 = ssub.s32 %s986_s13, %s1266_s25  ;;  %s168_s7 = sand.u32 1, %s978_s11  }
  0x24   : > { %p82_p11 = scmp.eq.s32.totalorder %s77_s6, 0  ;;  %s641_s8 = sshll.u32 %s168_s7, 7 }
  0x25   : > { %s653_s16 = sshll.u32 %s986_s13, 11  ;;  %s172_s26 = scalar_lea.vmem [#allocation6], %s641_s8 }
  0x26   : > { %s1113_s15 = scalar_select %p82_p11, %s978_s11, %s84_s3  }
  0x27   : > { %s181_s24 = scalar_lea.hbm %s1243_s1, %s653_s16  ;;  %s182_s29 = sshll.u32 %s172_s26, 4  ;;  %s183_s29 = int_to_ptr.vmem [resolvable:$true] %s182_s29 }
  0x28   : > { %p1121_p2 = pnand %p796_p0, %p1098_p12  ;;  %s169_s30 = scalar_lea.sflag [#allocation7], %s168_s7 }
  0x29   : > { %s891_s6 = scalar_lea.vmem %s183_s29, 2048  ;;  %s995_s3 = smov [#allocation6]  }
  0x2a   : > { %p880_p3 = pneg %p1121_p2  ;;  %p892_p5 = scmp.ne.s32.totalorder %s183_s29, %s891_s6 }
  0x2b   : > { %s896_s27 = sshll.u32 %s995_s3, 4  ;;  %s897_s27 = int_to_ptr.vmem [resolvable:$false] %s896_s27 }
  0x2c   : > { %p894_p7 = pnand %p892_p5, %p880_p3  ;;  %s898_s16 = scalar_lea.vmem %s897_s27, 4096 }
  0x2d   : > { %p899_p6 = scmp.lt.s32.totalorder %s183_s29, %s897_s27  ;;  %p900_p9 = scmp.lt.s32.totalorder %s898_s16, %s891_s6 }
  0x2e   : > { %p895_p4 = pneg %p894_p7 }
  0x2f   : > { %p901_p11 = por %p900_p9, %p899_p6 }
  0x31   : > { %p902_p10 = pnand %p901_p11, %p895_p4 }
  0x33   : > { %905 = shalt.err (!%p902_p10)
}
  0x34   : > { %s1256_s4 = smov 128   ;;  %194 = sbr.rel (%p1068_p8) target bundleno = 317 (0x13d), region = 28 }
  0x35   : > { %790 = dma.hbm_to_vmem [thread:$0]  (!%p1121_p2), %s181_s24, 2048, %s183_s29, %s169_s30, %s1256_s4, %s1256_s4, %s994_s28  }
  0x39   : > { %957 = dma.done.wait (%p1048_p1), [#allocation4], 2048  }
  0x3a   : > { %959 = vsyncadd (%p1048_p1), [#allocation4], 4294965248  ;;  %s1139_s27 = sand.u32 1, %s974_s10   ;;  %p1257_p10 = scmp.ne.s32.totalorder %s1249_s19, 0 }
  0x3b   : > { %s646_s7 = sshll.u32 %s1139_s27, 7  ;;  %s201_s8 = scalar_lea.sflag [#allocation7], %s1139_s27 }
  0x3c   : > { %s1145_s28 = scalar_lea.vmem [#allocation6], %s646_s7 }
  0x3d   : > { %961 = dma.done.wait (%p1257_p10), %s201_s8, 2048  }
  0x3e   : > { %963 = vsyncadd (%p1257_p10), %s201_s8, 4294965248  ;;  %v295_v0 = vld [vmem:[%s1145_s28 + $0x78] sm:$0xff]  ;;  %v294_v1 = vld [vmem:[%s1145_s28 + $0x70] sm:$0xff]  ;;  %s1169_s17 = scalar_lea.vmem [#allocation8], %s646_s7  ;;  %s654_s19 = sshll.u32 %s982_s12, 11 }
  0x3f   : > { %687 = vmatprep.subr.mxu0 %v295_v0  ;;  %743 = vmatprep.subr.mxu1 %v295_v0  ;;  %v293_v2 = vld [vmem:[%s1145_s28 + $0x68] sm:$0xff]  ;;  %v292_v3 = vld [vmem:[%s1145_s28 + $0x60] sm:$0xff]  ;;  %v291_v4 = vld [vmem:[%s1145_s28 + $0x58] sm:$0xff]  ;;  %s525_s21 = sshll.u32 %s1169_s17, 4  ;;  %s1188_s24 = scalar_lea.hbm %s1244_s2, %s654_s19  ;;  %s1190_s21 = int_to_ptr.vmem [resolvable:$true] %s525_s21 }
  0x40   : > { %688 = vmatpush3.msra.mxu0 %v295_v0  ;;  %759 = vmatpush3.msra.mxu1 %v295_v0  ;;  %v290_v5 = vld [vmem:[%s1145_s28 + $0x50] sm:$0xff]  ;;  %v289_v6 = vld [vmem:[%s1145_s28 + $0x48] sm:$0xff]  ;;  %v288_v7 = vld [vmem:[%s1145_s28 + $0x40] sm:$0xff]  ;;  %s509_s12 = scalar_lea.sflag [#allocation5], %s1139_s27  ;;  %s906_s26 = scalar_lea.vmem %s1190_s21, 2048 }
  0x41   : > { %689 = vmatprep.subr.mxu0 %v294_v1  ;;  %744 = vmatprep.subr.mxu1 %v294_v1  ;;  %v287_v8 = vld [vmem:[%s1145_s28 + $0x38] sm:$0xff]  ;;  %v286_v9 = vld [vmem:[%s1145_s28 + $0x30] sm:$0xff]  ;;  %v285_v10 = vld [vmem:[%s1145_s28 + $0x28] sm:$0xff]  ;;  %p907_p1 = scmp.ne.s32.totalorder %s1190_s21, %s906_s26  ;;  %s996_s29 = smov [#allocation8]  }
  0x42   : > { %690 = vmatpush3.msra.mxu0 %v294_v1  ;;  %760 = vmatpush3.msra.mxu1 %v294_v1  ;;  %v284_v11 = vld [vmem:[%s1145_s28 + $0x20] sm:$0xff]  ;;  %v283_v12 = vld [vmem:[%s1145_s28 + $0x18] sm:$0xff]  ;;  %v282_v13 = vld [vmem:[%s1145_s28 + $0x10] sm:$0xff]  ;;  %s910_s18 = sshll.u32 %s996_s29, 4  ;;  %s911_s18 = int_to_ptr.vmem [resolvable:$false] %s910_s18 }
  0x43   : > { %691 = vmatprep.subr.mxu0 %v293_v2  ;;  %745 = vmatprep.subr.mxu1 %v293_v2  ;;  %v281_v14 = vld [vmem:[%s1145_s28 + $0x8] sm:$0xff]  ;;  %v280_v15 = vld [vmem:[%s1145_s28] sm:$0xff]  ;;  %v266_v20 = vld [vmem:[#allocation3 + $0x10] sm:$0xff]  ;;  %p908_p8 = pnand %p907_p1, %p1104_p13  ;;  %s912_s30 = scalar_lea.vmem %s911_s18, 4096 }
  0x44   : > { %692 = vmatpush3.msra.mxu0 %v293_v2  ;;  %761 = vmatpush3.msra.mxu1 %v293_v2  ;;  %v264_v16 = vld [vmem:[#allocation3] sm:$0xff]  ;;  %v265_v18 = vld [vmem:[#allocation3 + $0x8] sm:$0xff]  ;;  %v274_v21 = vld [vmem:[#allocation3 + $0x50] sm:$0xff]  ;;  %p913_p0 = scmp.lt.s32.totalorder %s1190_s21, %s911_s18  ;;  %p914_p2 = scmp.lt.s32.totalorder %s912_s30, %s906_s26 }
  0x45   : > { %693 = vmatprep.subr.mxu0 %v292_v3  ;;  %746 = vmatprep.subr.mxu1 %v292_v3  ;;  %v272_v17 = vld [vmem:[#allocation3 + $0x40] sm:$0xff]  ;;  %v273_v19 = vld [vmem:[#allocation3 + $0x48] sm:$0xff]  ;;  %v267_v22 = vld [vmem:[#allocation3 + $0x18] sm:$0xff]  ;;  %p909_p12 = pneg %p908_p8 }
  0x46   : > { %694 = vmatpush3.msra.mxu0 %v292_v3  ;;  %762 = vmatpush3.msra.mxu1 %v292_v3  ;;  %v275_v23 = vld [vmem:[#allocation3 + $0x58] sm:$0xff]  ;;  %v268_v24 = vld [vmem:[#allocation3 + $0x20] sm:$0xff]  ;;  %v269_v26 = vld [vmem:[#allocation3 + $0x28] sm:$0xff]  ;;  %p915_p3 = por %p914_p2, %p913_p0 }
  0x47   : > { %695 = vmatprep.subr.mxu0 %v291_v4  ;;  %747 = vmatprep.subr.mxu1 %v291_v4  ;;  %v276_v25 = vld [vmem:[#allocation3 + $0x60] sm:$0xff]  ;;  %v277_v27 = vld [vmem:[#allocation3 + $0x68] sm:$0xff]  ;;  %v270_v28 = vld [vmem:[#allocation3 + $0x30] sm:$0xff] }
  0x48   : > { %696 = vmatpush3.msra.mxu0 %v291_v4  ;;  %763 = vmatpush3.msra.mxu1 %v291_v4  ;;  %v278_v29 = vld [vmem:[#allocation3 + $0x70] sm:$0xff]  ;;  %v271_v30 = vld [vmem:[#allocation3 + $0x38] sm:$0xff]  ;;  %p916_p5 = pnand %p915_p3, %p909_p12 }
  0x49   : > { %697 = vmatprep.subr.mxu0 %v290_v5  ;;  %748 = vmatprep.subr.mxu1 %v290_v5  ;;  %v279_v31 = vld [vmem:[#allocation3 + $0x78] sm:$0xff] }
  0x4a   : > { %698 = vmatpush3.msra.mxu0 %v290_v5  ;;  %764 = vmatpush3.msra.mxu1 %v290_v5 }
  0x4b   : > { %699 = vmatprep.subr.mxu0 %v289_v6  ;;  %749 = vmatprep.subr.mxu1 %v289_v6 }
  0x4c   : > { %700 = vmatpush3.msra.mxu0 %v289_v6  ;;  %765 = vmatpush3.msra.mxu1 %v289_v6 }
  0x4d   : > { %701 = vmatprep.subr.mxu0 %v288_v7  ;;  %750 = vmatprep.subr.mxu1 %v288_v7 }
  0x4e   : > { %702 = vmatpush3.msra.mxu0 %v288_v7  ;;  %766 = vmatpush3.msra.mxu1 %v288_v7 }
  0x4f   : > { %703 = vmatprep.subr.mxu0 %v287_v8  ;;  %751 = vmatprep.subr.mxu1 %v287_v8 }
  0x50   : > { %704 = vmatpush3.msra.mxu0 %v287_v8  ;;  %767 = vmatpush3.msra.mxu1 %v287_v8 }
  0x51   : > { %705 = vmatprep.subr.mxu0 %v286_v9  ;;  %752 = vmatprep.subr.mxu1 %v286_v9 }
  0x52   : > { %706 = vmatpush3.msra.mxu0 %v286_v9  ;;  %768 = vmatpush3.msra.mxu1 %v286_v9 }
  0x53   : > { %707 = vmatprep.subr.mxu0 %v285_v10  ;;  %753 = vmatprep.subr.mxu1 %v285_v10 }
  0x54   : > { %708 = vmatpush3.msra.mxu0 %v285_v10  ;;  %769 = vmatpush3.msra.mxu1 %v285_v10 }
  0x55   : > { %709 = vmatprep.subr.mxu0 %v284_v11  ;;  %754 = vmatprep.subr.mxu1 %v284_v11 }
  0x56   : > { %710 = vmatpush3.msra.mxu0 %v284_v11  ;;  %770 = vmatpush3.msra.mxu1 %v284_v11 }
  0x57   : > { %711 = vmatprep.subr.mxu0 %v283_v12  ;;  %755 = vmatprep.subr.mxu1 %v283_v12 }
  0x58   : > { %712 = vmatpush3.msra.mxu0 %v283_v12  ;;  %771 = vmatpush3.msra.mxu1 %v283_v12 }
  0x59   : > { %713 = vmatprep.subr.mxu0 %v282_v13  ;;  %756 = vmatprep.subr.mxu1 %v282_v13 }
  0x5a   : > { %714 = vmatpush3.msra.mxu0 %v282_v13  ;;  %772 = vmatpush3.msra.mxu1 %v282_v13 }
  0x5b   : > { %715 = vmatprep.subr.mxu0 %v281_v14  ;;  %757 = vmatprep.subr.mxu1 %v281_v14 }
  0x5c   : > { %716 = vmatpush3.msra.mxu0 %v281_v14  ;;  %773 = vmatpush3.msra.mxu1 %v281_v14 }
  0x5d   : > { %717 = vmatprep.subr.mxu0 %v280_v15  ;;  %758 = vmatprep.subr.mxu1 %v280_v15 }
  0x5e   : > { %718 = vmatpush3.msra.mxu0 %v280_v15  ;;  %774 = vmatpush3.msra.mxu1 %v280_v15 }
  0x5f   : > { %719 = vmatprep.mubr.f32.mxu0 %v264_v16  ;;  %731 = vmatprep.mubr.f32.mxu1 %v272_v17 }
  0x60   : > { %720 = vmatmul.mubr.f32.vlgmr.msra.gmra.mxu0 %v265_v18  ;;  %732 = vmatmul.mubr.f32.vlgmr.msra.gmra.mxu1 %v273_v19 }
  0x61   : > { %722 = vmatprep.mubr.f32.mxu0 %v266_v20  ;;  %734 = vmatprep.mubr.f32.mxu1 %v274_v21 }
  0x64   : > { %723 = vmatmul.mubr.f32.gmra.mxu0 %v267_v22  ;;  %735 = vmatmul.mubr.f32.gmra.mxu1 %v275_v23 }
  0x65   : > { %725 = vmatprep.mubr.f32.mxu0 %v268_v24  ;;  %737 = vmatprep.mubr.f32.mxu1 %v276_v25 }
  0x68   : > { %726 = vmatmul.mubr.f32.gmra.mxu0 %v269_v26  ;;  %738 = vmatmul.mubr.f32.gmra.mxu1 %v277_v27 }
  0x69   : > { %728 = vmatprep.mubr.f32.mxu0 %v270_v28  ;;  %740 = vmatprep.mubr.f32.mxu1 %v278_v29 }
  0x6c   : > { %729 = vmatmul.mubr.f32.gmra.mxu0 %v271_v30  ;;  %741 = vmatmul.mubr.f32.gmra.mxu1 %v279_v31 }
 0x120   : > { %v721_v32 = vpop.f32.mrf.mxu0  ;;  %v733_v33 = vpop.f32.mrf.mxu1 }
 0x121   : > { %493 = vst [vmem:[%s1169_s17 + $0x8] sm:$0xff] %v721_v32  ;;  %501 = vst [vmem:[%s1169_s17 + $0x48] sm:$0xff] %v733_v33 }
 0x122   : > { %v362_v34 = vpop.f32.mrf.mxu0  ;;  %v402_v35 = vpop.f32.mrf.mxu1 }
 0x123   : > { %492 = vst [vmem:[%s1169_s17] sm:$0xff] %v362_v34  ;;  %500 = vst [vmem:[%s1169_s17 + $0x40] sm:$0xff] %v402_v35 }
 0x124   : > { %v724_v36 = vpop.f32.mrf.mxu0  ;;  %v736_v37 = vpop.f32.mrf.mxu1 }
 0x125   : > { %495 = vst [vmem:[%s1169_s17 + $0x18] sm:$0xff] %v724_v36  ;;  %503 = vst [vmem:[%s1169_s17 + $0x58] sm:$0xff] %v736_v37 }
 0x126   : > { %v372_v38 = vpop.f32.mrf.mxu0  ;;  %v412_v39 = vpop.f32.mrf.mxu1 }
 0x127   : > { %494 = vst [vmem:[%s1169_s17 + $0x10] sm:$0xff] %v372_v38  ;;  %502 = vst [vmem:[%s1169_s17 + $0x50] sm:$0xff] %v412_v39 }
 0x128   : > { %v727_v40 = vpop.f32.mrf.mxu0  ;;  %v739_v41 = vpop.f32.mrf.mxu1 }
 0x129   : > { %497 = vst [vmem:[%s1169_s17 + $0x28] sm:$0xff] %v727_v40  ;;  %505 = vst [vmem:[%s1169_s17 + $0x68] sm:$0xff] %v739_v41 }
 0x12a   : > { %v382_v42 = vpop.f32.mrf.mxu0  ;;  %v422_v43 = vpop.f32.mrf.mxu1 }
 0x12b   : > { %496 = vst [vmem:[%s1169_s17 + $0x20] sm:$0xff] %v382_v42  ;;  %504 = vst [vmem:[%s1169_s17 + $0x60] sm:$0xff] %v422_v43 }
 0x12c   : > { %v730_v44 = vpop.f32.mrf.mxu0  ;;  %v742_v45 = vpop.f32.mrf.mxu1 }
 0x12d   : > { %499 = vst [vmem:[%s1169_s17 + $0x38] sm:$0xff] %v730_v44  ;;  %507 = vst [vmem:[%s1169_s17 + $0x78] sm:$0xff] %v742_v45 }
 0x12e   : > { %v392_v46 = vpop.f32.mrf.mxu0  ;;  %v432_v47 = vpop.f32.mrf.mxu1 }
 0x12f   : > { %498 = vst [vmem:[%s1169_s17 + $0x30] sm:$0xff] %v392_v46  ;;  %506 = vst [vmem:[%s1169_s17 + $0x70] sm:$0xff] %v432_v47 }
 0x130   : > { %919 = shalt.err (!%p916_p5)
}
 0x131   : > { %s920_s6 = scalar_lea.hbm %s1188_s24, 2048  ;;  %s924_s4 = scalar_lea.hbm %s1244_s2, 4096 }
 0x132   : > { %p921_p7 = scmp.ne.s32.totalorder %s1188_s24, %s920_s6  ;;  %p925_p9 = scmp.lt.s32.totalorder %s1188_s24, %s1244_s2 }
 0x133   : > { %p926_p11 = scmp.lt.s32.totalorder %s924_s4, %s920_s6 }
 0x134   : > { %p922_p4 = pnand %p921_p7, %p1104_p13 }
 0x135   : > { %p927_p10 = por %p926_p11, %p925_p9 }
 0x136   : > { %p923_p6 = pneg %p922_p4 }
 0x138   : > { %p928_p1 = pnand %p927_p10, %p923_p6 }
 0x13a   : > { %931 = shalt.err (!%p928_p1)
}
 0x13b   : > { %s997_s28 = smov 128   ;;  %s998_s17 = smov 8  }
 0x13c   : > { %781 = dma.vmem_to_hbm [thread:$0]  (%p1104_p13), %s1190_s21, 2048, %s1188_s24, %s509_s12, %s997_s28, %s997_s28, %s998_s17  }
 0x13d PF: > { %s540_s19 = sand.u32 1, %s970_s9   ;;  %p1258_p8 = scmp.ne.s32.totalorder %s1250_s20, 0 }
 0x13e   : > { %p1259_p12 = scmp.ge.s32.totalorder %s990_s14, 2  ;;  %s541_s22 = scalar_lea.sflag [#allocation5], %s540_s19 }
 0x140   : > { %p792_p0 = pnand %p1259_p12, %p1258_p8 }
 0x142   : > { %p793_p2 = pneg %p792_p0 }
 0x144   : > { %965 = dma.done.wait (%p793_p2), %s541_s22, 2048  }
 0x145   : > { %967 = vsyncadd (%p793_p2), %s541_s22, 4294965248  ;;  %s19_s14 = sadd.s32 1, %s990_s14   ;;  %s1260_s9 = smov %s974_s10 }
 0x146   : > { %p16_p3 = scmp.ge.s32.totalorder %s19_s14, 4   ;;  %s1261_s10 = smov %s978_s11 }
 0x147   : > { %s1262_s11 = smov %s1113_s15  ;;  %s1263_s12 = smov %s986_s13 }
 0x148   : > { %s1264_s13 = smov %s1266_s25  ;;  %18 = sbr.rel (!%p16_p3) target bundleno = 7 (0x7), region = 87 }
 0x14d   :  { %546 = vsyncpa [#allocation4], 1 }
 0x14e   :  { %548 = vsyncpa [#allocation4 + $0x1], 1 }
 0x14f   :  { %549 = vsyncpa [#allocation7], 1 }
 0x150   :  { %551 = vsyncpa [#allocation7 + $0x1], 1 }
 0x151   :  { %552 = vsyncpa [#allocation5], 1 }
 0x152   :  { %554 = vsyncpa [#allocation5 + $0x1], 1 }

</bundles_post_ra>
